<compile_context>
chip_gen: v5e
topology: v5e:2x2
jax: 0.10.0
libtpu: 0.0.40
codegen_flags: <defaults>
</compile_context>

<pallas_src>
import functools
import math

import jax
import jax.numpy as jnp
from jax.experimental import pallas as pl
from jax.experimental.pallas import tpu as pltpu

BN_EPS = 1e-5
LEAKY_SLOPE = 0.2


def _round_up(x, m):
    return (x + m - 1) // m * m


def _leaky_relu(x):
    return jnp.where(x >= 0, x, LEAKY_SLOPE * x)


# --------------------------------------------------------------------------- #
# Kernel 1: Linear(D,128) partial contraction, K-tiled, f32 accumulate in the
# output block.  Grid = (n_split, nk_per): the leading axis is "parallel" (both
# TensorCores on v7x), the trailing axis is the K reduction.
# --------------------------------------------------------------------------- #
def _layer1_partial_kernel(x_ref, w1_ref, part_ref):
    k = pl.program_id(1)

    @pl.when(k == 0)
    def _():
        part_ref[...] = jnp.zeros_like(part_ref)

    part_ref[...] += jnp.dot(x_ref[...], w1_ref[...],
                             preferred_element_type=jnp.float32)


# --------------------------------------------------------------------------- #
# Kernel 2: epilogue.  Combine per-split partials, then
#   BN1 -> LeakyReLU -> Linear(128,256) -> BN2 -> LeakyReLU -> Linear(256,1) -> Sigmoid
# All data here is tiny (<=B_pad x 256), single grid step, everything in VMEM.
# --------------------------------------------------------------------------- #
def _epilogue_kernel(part_ref, slab1_ref, w2_ref, slab2_ref, out_ref, *, n_valid):
    b_pad = out_ref.shape[0]
    inv_n = jnp.float32(1.0 / n_valid)
    row_valid = jax.lax.broadcasted_iota(jnp.int32, (b_pad, 1), 0) < n_valid

    def bn_leaky(h, gamma, beta):
        # Two-pass batch stats (better numerics than E[x^2]-E[x]^2); padded rows are
        # excluded from the centred sum and the divisor is the real batch size.
        mu = jnp.sum(h, axis=0, keepdims=True) * inv_n
        hc = jnp.where(row_valid, h - mu, 0.0)
        var = jnp.sum(hc * hc, axis=0, keepdims=True) * inv_n
        a = gamma * jax.lax.rsqrt(var + BN_EPS)
        c = beta - mu * a
        return _leaky_relu(h * a + c)

    # Combine the per-core partial sums of Linear(D,128).  Padded batch rows are
    # exactly zero (zero inputs, bias folded into BN), so BN1 sums are unpolluted.
    h = jnp.sum(part_ref[...], axis=0)                          # (B_pad, 128) f32
    h = bn_leaky(h, slab1_ref[0:1, :], slab1_ref[1:2, :])
    h = jnp.where(row_valid, h, 0.0)        # keep padded rows out of layer-2 stats

    # Linear(128,256) (bias folded into the following BN).
    h = jnp.dot(h.astype(w2_ref.dtype), w2_ref[...],
                preferred_element_type=jnp.float32)
    h = bn_leaky(h, slab2_ref[0:1, :], slab2_ref[1:2, :])

    # Linear(256,1): VPU multiply + lane reduction (no N=1 MXU pass).
    w3_row = slab2_ref[2:3, :]                                  # (1, 256)
    b3 = slab2_ref[3:4, 0:1]                                    # (1, 1)
    logit = jnp.sum(h * w3_row, axis=-1, keepdims=True) + b3

    # Sigmoid: exp + approx reciprocal ride the otherwise-idle EUP slot.
    out_ref[...] = pl.reciprocal(1.0 + jnp.exp(-logit), approx=True)


# --------------------------------------------------------------------------- #
# One-time parameter preparation (hoisted out of the per-call path).
# --------------------------------------------------------------------------- #
def prepare_params(params, *, d_in, tk=8192, use_bf16=True):
    """Pad + cast + pack parameters ONCE.  Do not call per forward: re-building the
    pre-padded bf16 w1 slab every step would ~3x the kernel's HBM traffic."""
    (w1, b1, g1, be1, w2, b2, g2, be2, w3, b3) = params
    del b1, b2  # exactly cancelled by training-mode BatchNorm mean subtraction

    mm_dtype = jnp.bfloat16 if use_bf16 else jnp.float32

    # Tiling plan over the flattened feature dimension D.
    if d_in <= tk:
        d_pad = _round_up(d_in, 128)
        tk_eff, n_split, nk_per = d_pad, 1, 1
    else:
        nk_total = pl.cdiv(d_in, tk)
        # Leading "parallel" axis of size 2: both TensorCores on v7x stream half of
        # w1 each; harmless (serialized) on single-TC v5e/v6e.
        n_split = 2 if nk_total >= 2 else 1
        nk_per = pl.cdiv(nk_total, n_split)
        d_pad = n_split * nk_per * tk
        tk_eff = tk

    w1_pad = (jnp.zeros((d_pad, 128), jnp.float32)
              .at[:d_in, :].set(w1.reshape(d_in, 128))
              .astype(mm_dtype))
    w2_mm = w2.reshape(128, 256).astype(mm_dtype)

    # Pack the small per-feature vectors into two slabs (fewer tiny DMAs).
    slab1 = jnp.concatenate(
        [g1.reshape(1, 128), be1.reshape(1, 128)], axis=0).astype(jnp.float32)
    slab2 = jnp.zeros((4, 256), jnp.float32)
    slab2 = slab2.at[0, :].set(g2.reshape(-1))
    slab2 = slab2.at[1, :].set(be2.reshape(-1))
    slab2 = slab2.at[2, :].set(w3.reshape(-1))
    slab2 = slab2.at[3, 0].set(b3.reshape(-1)[0])

    cfg = dict(d_in=d_in, d_pad=d_pad, tk=tk_eff, n_split=n_split, nk_per=nk_per,
               use_bf16=use_bf16)
    return dict(w1=w1_pad, w2=w2_mm, slab1=slab1, slab2=slab2, cfg=cfg)


# --------------------------------------------------------------------------- #
# Forward pass.
# --------------------------------------------------------------------------- #
def discriminator_forward(audio, prepared):
    cfg = prepared["cfg"]
    d_in, d_pad, tk = cfg["d_in"], cfg["d_pad"], cfg["tk"]
    n_split, nk_per = cfg["n_split"], cfg["nk_per"]
    use_bf16 = cfg["use_bf16"]
    mm_dtype = jnp.bfloat16 if use_bf16 else jnp.float32

    B = audio.shape[0]
    D = math.prod(audio.shape[1:])
    assert D == d_in, (D, d_in)

    # Pad batch so bf16 LHS tiles fill packed sublanes (one bf16 vreg = [16,128]).
    b_mult = 16 if use_bf16 else 8
    B_pad = _round_up(max(B, 1), b_mult)

    x = audio.reshape(B, D).astype(jnp.float32)   # same as torch .view(B, -1)
    x_pad = (jnp.zeros((B_pad, d_pad), jnp.float32)
             .at[:B, :D].set(x)
             .astype(mm_dtype))

    itemsize = jnp.dtype(mm_dtype).itemsize
    # VMEM footprint: double-buffered x / w1 tiles + double-buffered partial output.
    resident = 2 * (B_pad * tk + tk * 128) * itemsize + 2 * B_pad * 128 * 4
    try:
        vmem_cap = int(pltpu.get_tpu_info().vmem_capacity_bytes)
    except Exception:
        vmem_cap = 64 << 20                       # conservative (v7x physical VMEM)
    vmem_limit = int(min(int(0.75 * vmem_cap), max(4 * resident, 32 << 20)))

    cost = pl.CostEstimate(
        flops=2 * B_pad * d_pad * 128,
        transcendentals=0,
        bytes_accessed=(B_pad * d_pad + d_pad * 128) * itemsize
                       + n_split * B_pad * 128 * 4,
    )

    # NOTE: default double-buffering hides the DMA at tk>=4096; if a trace still
    # shows exposed DMA, pipeline_mode=pl.Buffered(3) on x/w1 is cheap insurance.
    partial = pl.pallas_call(
        _layer1_partial_kernel,
        out_shape=jax.ShapeDtypeStruct((n_split, B_pad, 128), jnp.float32),
        grid_spec=pltpu.PrefetchScalarGridSpec(
            num_scalar_prefetch=0,
            grid=(n_split, nk_per),
            in_specs=[
                pl.BlockSpec((B_pad, tk), lambda p, k: (0, p * nk_per + k)),
                pl.BlockSpec((tk, 128), lambda p, k: (p * nk_per + k, 0)),
            ],
            out_specs=pl.BlockSpec((None, B_pad, 128), lambda p, k: (p, 0, 0)),
        ),
        compiler_params=pltpu.CompilerParams(
            dimension_semantics=("parallel", "arbitrary"),
            vmem_limit_bytes=vmem_limit,
        ),
        cost_estimate=cost,
    )(x_pad, prepared["w1"])

    out_pad = pl.pallas_call(
        functools.partial(_epilogue_kernel, n_valid=B),
        out_shape=jax.ShapeDtypeStruct((B_pad, 1), jnp.float32),
    )(partial, prepared["slab1"], prepared["w2"], prepared["slab2"])

    return out_pad[:B]


# --------------------------------------------------------------------------- #
# Parameter init + pure-JAX reference (PyTorch training-mode semantics).
# --------------------------------------------------------------------------- #
def init_params(key, d_in):
    ks = jax.random.split(key, 6)
    # Linear weights stored as (in, out) so the math is x @ W.
    w1 = jax.random.normal(ks[0], (d_in, 128), jnp.float32) * 0.02
    b1 = jax.random.normal(ks[1], (1, 128), jnp.float32) * 0.01
    g1 = jnp.ones((1, 128), jnp.float32)          # BatchNorm1d(128).weight
    be1 = jnp.zeros((1, 128), jnp.float32)        # BatchNorm1d(128).bias
    w2 = jax.random.normal(ks[2], (128, 256), jnp.float32) * 0.02
    b2 = jax.random.normal(ks[3], (1, 256), jnp.float32) * 0.01
    g2 = jnp.ones((1, 256), jnp.float32)          # BatchNorm1d(256).weight
    be2 = jnp.zeros((1, 256), jnp.float32)        # BatchNorm1d(256).bias
    w3 = jax.random.normal(ks[4], (256, 1), jnp.float32) * 0.02
    b3 = jax.random.normal(ks[5], (1, 1), jnp.float32) * 0.01
    return (w1, b1, g1, be1, w2, b2, g2, be2, w3, b3)


def reference_forward(audio, params, *, mm_dtype=jnp.float32):
    (w1, b1, g1, be1, w2, b2, g2, be2, w3, b3) = params
    x = audio.reshape(audio.shape[0], -1).astype(jnp.float32)

    def bn(h, g, be):
        mu = jnp.mean(h, axis=0, keepdims=True)
        var = jnp.mean((h - mu) ** 2, axis=0, keepdims=True)
        return (h - mu) / jnp.sqrt(var + BN_EPS) * g + be

    def mm(a, b):
        return jnp.dot(a.astype(mm_dtype), b.astype(mm_dtype),
                       preferred_element_type=jnp.float32)

    h = _leaky_relu(bn(mm(x, w1) + b1, g1, be1))
    h = _leaky_relu(bn(mm(h, w2) + b2, g2, be2))
    logit = h @ w3 + b3
    return jax.nn.sigmoid(logit)


if __name__ == "__main__":
    # Small shapes consistent with the module: input_shape = (1, n_mels, T) with
    # n_mels = 128 and a small T = 16  ->  D = 2048; batch B = 4.
    B, C, H, W = 4, 1, 128, 16
    d_in = C * H * W

    key = jax.random.PRNGKey(0)
    k_x, k_p = jax.random.split(key)
    audio = jax.random.normal(k_x, (B, C, H, W), jnp.float32)
    params = init_params(k_p, d_in)

    ref_bf16 = reference_forward(audio, params, mm_dtype=jnp.bfloat16)
    ref_f32 = reference_forward(audio, params, mm_dtype=jnp.float32)

    # Path 1: D fits in a single K tile (default tk = 8192).
    prepared = prepare_params(params, d_in=d_in)
    fwd = jax.jit(functools.partial(discriminator_forward, prepared=prepared))
    out = jax.block_until_ready(fwd(audio))
    assert out.shape == (B, 1)
    # Tight check vs a reference using the same bf16 matmul operands.
    assert jnp.allclose(out, ref_bf16, atol=5e-3, rtol=5e-3), (out, ref_bf16)
    # Loose check vs full-f32 PyTorch-semantics reference (bf16 MXU + approx sigmoid).
    assert jnp.allclose(out, ref_f32, atol=5e-2, rtol=5e-2), (out, ref_f32)

    # Path 2: small tk forces the K-tiled grid + 2-way parallel split (the layout
    # used for realistic D ~ 2e6; on v7x the split runs on both TensorCores).
    prepared_tiled = prepare_params(params, d_in=d_in, tk=512)
    fwd_tiled = jax.jit(functools.partial(discriminator_forward,
                                          prepared=prepared_tiled))
    out_tiled = jax.block_until_ready(fwd_tiled(audio))
    assert out_tiled.shape == (B, 1)
    assert jnp.allclose(out_tiled, ref_bf16, atol=5e-3, rtol=5e-3), (out_tiled, ref_bf16)
    assert jnp.allclose(out_tiled, ref_f32, atol=5e-2, rtol=5e-2), (out_tiled, ref_f32)

    print("KERNEL_OK")
</pallas_src>

<mosaic_0001>
module attributes {stable_mosaic.version = 11 : i64} {
  func.func @_epilogue_kernel(%arg0: memref<1x16x128xf32, #tpu.memory_space<vmem>>, %arg1: memref<2x128xf32, #tpu.memory_space<vmem>>, %arg2: memref<128x256xbf16, #tpu.memory_space<vmem>>, %arg3: memref<4x256xf32, #tpu.memory_space<vmem>>, %arg4: memref<16x1xf32, #tpu.memory_space<vmem>>) attributes {dimension_semantics = [], scalar_prefetch = 0 : i64, scratch_operands = 0 : i64, tpu.core_type = #tpu.core_type<tc>} {
    %0 = tpu.iota {dimensions = array<i32: 0>} : vector<16x1xi32>
    %c4_i32 = arith.constant 4 : i32
    %1 = vector.broadcast %c4_i32 : i32 to vector<16x1xi32>
    %2 = arith.cmpi slt, %0, %1 : vector<16x1xi32>
    %c0 = arith.constant 0 : index
    %c0_0 = arith.constant 0 : index
    %c0_1 = arith.constant 0 : index
    %3 = vector.load %arg0[%c0, %c0_0, %c0_1] : memref<1x16x128xf32, #tpu.memory_space<vmem>>, vector<1x16x128xf32>
    %cst = arith.constant dense<0.000000e+00> : vector<16x128xf32>
    %4 = vector.multi_reduction <add>, %3, %cst [0] : vector<1x16x128xf32> to vector<16x128xf32>
    %c0_2 = arith.constant 0 : index
    %c0_3 = arith.constant 0 : index
    %5 = vector.load %arg1[%c0_2, %c0_3] : memref<2x128xf32, #tpu.memory_space<vmem>>, vector<1x128xf32>
    %c1 = arith.constant 1 : index
    %c0_4 = arith.constant 0 : index
    %6 = vector.load %arg1[%c1, %c0_4] : memref<2x128xf32, #tpu.memory_space<vmem>>, vector<1x128xf32>
    %cst_5 = arith.constant dense<0.000000e+00> : vector<128xf32>
    %7 = vector.multi_reduction <add>, %4, %cst_5 [0] : vector<16x128xf32> to vector<128xf32>
    %8 = vector.shape_cast %7 : vector<128xf32> to vector<1x128xf32>
    %cst_6 = arith.constant 2.500000e-01 : f32
    %9 = vector.broadcast %cst_6 : f32 to vector<1x128xf32>
    %10 = arith.mulf %8, %9 : vector<1x128xf32>
    %11 = vector.broadcast %10 : vector<1x128xf32> to vector<16x128xf32>
    %12 = arith.subf %4, %11 : vector<16x128xf32>
    %cst_7 = arith.constant 0.000000e+00 : f32
    %13 = vector.shape_cast %2 : vector<16x1xi1> to vector<16x1xi1>
    %14 = vector.broadcast %13 : vector<16x1xi1> to vector<16x128xi1>
    %15 = vector.broadcast %cst_7 : f32 to vector<16x128xf32>
    %16 = arith.select %14, %12, %15 : vector<16x128xi1>, vector<16x128xf32>
    %17 = arith.mulf %16, %16 : vector<16x128xf32>
    %cst_8 = arith.constant dense<0.000000e+00> : vector<128xf32>
    %18 = vector.multi_reduction <add>, %17, %cst_8 [0] : vector<16x128xf32> to vector<128xf32>
    %19 = vector.shape_cast %18 : vector<128xf32> to vector<1x128xf32>
    %cst_9 = arith.constant 2.500000e-01 : f32
    %20 = vector.broadcast %cst_9 : f32 to vector<1x128xf32>
    %21 = arith.mulf %19, %20 : vector<1x128xf32>
    %cst_10 = arith.constant 9.99999974E-6 : f32
    %22 = vector.broadcast %cst_10 : f32 to vector<1x128xf32>
    %23 = arith.addf %21, %22 : vector<1x128xf32>
    %24 = math.rsqrt %23 : vector<1x128xf32>
    %25 = arith.mulf %5, %24 : vector<1x128xf32>
    %26 = arith.mulf %10, %25 : vector<1x128xf32>
    %27 = arith.subf %6, %26 : vector<1x128xf32>
    %28 = vector.broadcast %25 : vector<1x128xf32> to vector<16x128xf32>
    %29 = arith.mulf %4, %28 : vector<16x128xf32>
    %30 = vector.broadcast %27 : vector<1x128xf32> to vector<16x128xf32>
    %31 = arith.addf %29, %30 : vector<16x128xf32>
    %cst_11 = arith.constant 0.000000e+00 : f32
    %32 = vector.broadcast %cst_11 : f32 to vector<16x128xf32>
    %33 = arith.cmpf oge, %31, %32 : vector<16x128xf32>
    %cst_12 = arith.constant 2.000000e-01 : f32
    %34 = vector.broadcast %cst_12 : f32 to vector<16x128xf32>
    %35 = arith.mulf %34, %31 : vector<16x128xf32>
    %36 = arith.select %33, %31, %35 : vector<16x128xi1>, vector<16x128xf32>
    %cst_13 = arith.constant 0.000000e+00 : f32
    %37 = vector.shape_cast %2 : vector<16x1xi1> to vector<16x1xi1>
    %38 = vector.broadcast %37 : vector<16x1xi1> to vector<16x128xi1>
    %39 = vector.broadcast %cst_13 : f32 to vector<16x128xf32>
    %40 = arith.select %38, %36, %39 : vector<16x128xi1>, vector<16x128xf32>
    %41 = arith.truncf %40 : vector<16x128xf32> to vector<16x128xbf16>
    %c0_14 = arith.constant 0 : index
    %c0_15 = arith.constant 0 : index
    %42 = vector.load %arg2[%c0_14, %c0_15] : memref<128x256xbf16, #tpu.memory_space<vmem>>, vector<128x256xbf16>
    %cst_16 = arith.constant dense<0.000000e+00> : vector<16x256xf32>
    %43 = tpu.matmul %41, %42, %cst_16 {dimension_numbers = #tpu.dot_dimension_numbers<[1], [0], [0], [1], [0, 0, 1, 1], [], []>} : vector<16x128xbf16>, vector<128x256xbf16>, vector<16x256xf32> -> vector<16x256xf32>
    %c0_17 = arith.constant 0 : index
    %c0_18 = arith.constant 0 : index
    %44 = vector.load %arg3[%c0_17, %c0_18] : memref<4x256xf32, #tpu.memory_space<vmem>>, vector<1x256xf32>
    %c1_19 = arith.constant 1 : index
    %c0_20 = arith.constant 0 : index
    %45 = vector.load %arg3[%c1_19, %c0_20] : memref<4x256xf32, #tpu.memory_space<vmem>>, vector<1x256xf32>
    %cst_21 = arith.constant dense<0.000000e+00> : vector<256xf32>
    %46 = vector.multi_reduction <add>, %43, %cst_21 [0] : vector<16x256xf32> to vector<256xf32>
    %47 = vector.shape_cast %46 : vector<256xf32> to vector<1x256xf32>
    %cst_22 = arith.constant 2.500000e-01 : f32
    %48 = vector.broadcast %cst_22 : f32 to vector<1x256xf32>
    %49 = arith.mulf %47, %48 : vector<1x256xf32>
    %50 = vector.broadcast %49 : vector<1x256xf32> to vector<16x256xf32>
    %51 = arith.subf %43, %50 : vector<16x256xf32>
    %cst_23 = arith.constant 0.000000e+00 : f32
    %52 = vector.shape_cast %2 : vector<16x1xi1> to vector<16x1xi1>
    %53 = vector.broadcast %52 : vector<16x1xi1> to vector<16x256xi1>
    %54 = vector.broadcast %cst_23 : f32 to vector<16x256xf32>
    %55 = arith.select %53, %51, %54 : vector<16x256xi1>, vector<16x256xf32>
    %56 = arith.mulf %55, %55 : vector<16x256xf32>
    %cst_24 = arith.constant dense<0.000000e+00> : vector<256xf32>
    %57 = vector.multi_reduction <add>, %56, %cst_24 [0] : vector<16x256xf32> to vector<256xf32>
    %58 = vector.shape_cast %57 : vector<256xf32> to vector<1x256xf32>
    %cst_25 = arith.constant 2.500000e-01 : f32
    %59 = vector.broadcast %cst_25 : f32 to vector<1x256xf32>
    %60 = arith.mulf %58, %59 : vector<1x256xf32>
    %cst_26 = arith.constant 9.99999974E-6 : f32
    %61 = vector.broadcast %cst_26 : f32 to vector<1x256xf32>
    %62 = arith.addf %60, %61 : vector<1x256xf32>
    %63 = math.rsqrt %62 : vector<1x256xf32>
    %64 = arith.mulf %44, %63 : vector<1x256xf32>
    %65 = arith.mulf %49, %64 : vector<1x256xf32>
    %66 = arith.subf %45, %65 : vector<1x256xf32>
    %67 = vector.broadcast %64 : vector<1x256xf32> to vector<16x256xf32>
    %68 = arith.mulf %43, %67 : vector<16x256xf32>
    %69 = vector.broadcast %66 : vector<1x256xf32> to vector<16x256xf32>
    %70 = arith.addf %68, %69 : vector<16x256xf32>
    %cst_27 = arith.constant 0.000000e+00 : f32
    %71 = vector.broadcast %cst_27 : f32 to vector<16x256xf32>
    %72 = arith.cmpf oge, %70, %71 : vector<16x256xf32>
    %cst_28 = arith.constant 2.000000e-01 : f32
    %73 = vector.broadcast %cst_28 : f32 to vector<16x256xf32>
    %74 = arith.mulf %73, %70 : vector<16x256xf32>
    %75 = arith.select %72, %70, %74 : vector<16x256xi1>, vector<16x256xf32>
    %c2 = arith.constant 2 : index
    %c0_29 = arith.constant 0 : index
    %76 = vector.load %arg3[%c2, %c0_29] : memref<4x256xf32, #tpu.memory_space<vmem>>, vector<1x256xf32>
    %c3 = arith.constant 3 : index
    %c0_30 = arith.constant 0 : index
    %77 = vector.load %arg3[%c3, %c0_30] : memref<4x256xf32, #tpu.memory_space<vmem>>, vector<1x1xf32>
    %78 = vector.broadcast %76 : vector<1x256xf32> to vector<16x256xf32>
    %79 = arith.mulf %75, %78 : vector<16x256xf32>
    %cst_31 = arith.constant dense<0.000000e+00> : vector<16xf32>
    %80 = vector.multi_reduction <add>, %79, %cst_31 [1] : vector<16x256xf32> to vector<16xf32>
    %81 = vector.shape_cast %80 : vector<16xf32> to vector<16x1xf32>
    %82 = vector.broadcast %77 : vector<1x1xf32> to vector<16x1xf32>
    %83 = arith.addf %81, %82 : vector<16x1xf32>
    %cst_32 = arith.constant 0.000000e+00 : f32
    %84 = vector.broadcast %cst_32 : f32 to vector<16x1xf32>
    %85 = arith.subf %84, %83 : vector<16x1xf32>
    %86 = math.exp %85 : vector<16x1xf32>
    %cst_33 = arith.constant 1.000000e+00 : f32
    %87 = vector.broadcast %cst_33 : f32 to vector<16x1xf32>
    %88 = arith.addf %87, %86 : vector<16x1xf32>
    %89 = tpu.reciprocal %88 {approx = true} : vector<16x1xf32> -> vector<16x1xf32>
    %c0_34 = arith.constant 0 : index
    %c0_35 = arith.constant 0 : index
    %90 = vector.load %arg4[%c0_34, %c0_35] : memref<16x1xf32, #tpu.memory_space<vmem>>, vector<16x1xf32>
    tpu.vector_store %arg4[%c0_34, %c0_35], %89 {strides = array<i32>} : memref<16x1xf32, #tpu.memory_space<vmem>>, vector<16x1xf32>,
    return
  }
}

module attributes {stable_mosaic.version = 11 : i64} {
  func.func @_layer1_partial_kernel(%arg0: i32, %arg1: i32, %arg2: memref<16x2048xbf16, #tpu.memory_space<vmem>>, %arg3: memref<2048x128xbf16, #tpu.memory_space<vmem>>, %arg4: memref<1x16x128xf32, #tpu.memory_space<vmem>>) attributes {dimension_semantics = [#tpu.dimension_semantics<parallel>, #tpu.dimension_semantics<arbitrary>], iteration_bounds = array<i64: 1, 1>, scalar_prefetch = 0 : i64, scratch_operands = 0 : i64, tpu.core_type = #tpu.core_type<tc>, window_params = [{transform_indices = @transform_0, window_bounds = array<i64: 16, 2048>}, {transform_indices = @transform_1, window_bounds = array<i64: 2048, 128>}, {transform_indices = @transform_2, window_bounds = array<i64: 1, 16, 128>}]} {
    %c0_i32 = arith.constant 0 : i32
    %0 = arith.cmpi eq, %arg1, %c0_i32 : i32
    %1 = arith.extui %0 : i1 to i32
    %c0_i32_0 = arith.constant 0 : i32
    %2 = arith.cmpi ne, %1, %c0_i32_0 : i32
    scf.if %2 {
      %cst_10 = arith.constant 0.000000e+00 : f32
      %12 = vector.broadcast %cst_10 : f32 to vector<16x128xf32>
      %c0_11 = arith.constant 0 : index
      %c0_12 = arith.constant 0 : index
      %c0_13 = arith.constant 0 : index
      %13 = vector.load %arg4[%c0_11, %c0_12, %c0_13] : memref<1x16x128xf32, #tpu.memory_space<vmem>>, vector<1x16x128xf32>
      %14 = vector.shape_cast %13 : vector<1x16x128xf32> to vector<16x128xf32>
      %15 = vector.shape_cast %12 : vector<16x128xf32> to vector<1x16x128xf32>
      tpu.vector_store %arg4[%c0_11, %c0_12, %c0_13], %15 {strides = array<i32>} : memref<1x16x128xf32, #tpu.memory_space<vmem>>, vector<1x16x128xf32>,
    } else {
    }
    %c0 = arith.constant 0 : index
    %c0_1 = arith.constant 0 : index
    %c0_2 = arith.constant 0 : index
    %3 = vector.load %arg4[%c0, %c0_1, %c0_2] : memref<1x16x128xf32, #tpu.memory_space<vmem>>, vector<1x16x128xf32>
    %4 = vector.shape_cast %3 : vector<1x16x128xf32> to vector<16x128xf32>
    %c0_3 = arith.constant 0 : index
    %c0_4 = arith.constant 0 : index
    %5 = vector.load %arg2[%c0_3, %c0_4] : memref<16x2048xbf16, #tpu.memory_space<vmem>>, vector<16x2048xbf16>
    %c0_5 = arith.constant 0 : index
    %c0_6 = arith.constant 0 : index
    %6 = vector.load %arg3[%c0_5, %c0_6] : memref<2048x128xbf16, #tpu.memory_space<vmem>>, vector<2048x128xbf16>
    %cst = arith.constant dense<0.000000e+00> : vector<16x128xf32>
    %7 = tpu.matmul %5, %6, %cst {dimension_numbers = #tpu.dot_dimension_numbers<[1], [0], [0], [1], [0, 0, 1, 1], [], []>} : vector<16x2048xbf16>, vector<2048x128xbf16>, vector<16x128xf32> -> vector<16x128xf32>
    %8 = arith.addf %4, %7 : vector<16x128xf32>
    %c0_7 = arith.constant 0 : index
    %c0_8 = arith.constant 0 : index
    %c0_9 = arith.constant 0 : index
    %9 = vector.load %arg4[%c0_7, %c0_8, %c0_9] : memref<1x16x128xf32, #tpu.memory_space<vmem>>, vector<1x16x128xf32>
    %10 = vector.shape_cast %9 : vector<1x16x128xf32> to vector<16x128xf32>
    %11 = vector.shape_cast %8 : vector<16x128xf32> to vector<1x16x128xf32>
    tpu.vector_store %arg4[%c0_7, %c0_8, %c0_9], %11 {strides = array<i32>} : memref<1x16x128xf32, #tpu.memory_space<vmem>>, vector<1x16x128xf32>,
    return
  }
  func.func @transform_0(%arg0: i32, %arg1: i32) -> (i32, i32) {
    %c1_i32 = arith.constant 1 : i32
    %0 = arith.muli %arg0, %c1_i32 : i32
    %1 = arith.addi %0, %arg1 : i32
    %c0_i32 = arith.constant 0 : i32
    %c0_i32_0 = arith.constant 0 : i32
    return %c0_i32, %1 : i32, i32
  }
  func.func @transform_1(%arg0: i32, %arg1: i32) -> (i32, i32) {
    %c1_i32 = arith.constant 1 : i32
    %0 = arith.muli %arg0, %c1_i32 : i32
    %1 = arith.addi %0, %arg1 : i32
    %c0_i32 = arith.constant 0 : i32
    %c0_i32_0 = arith.constant 0 : i32
    return %1, %c0_i32 : i32, i32
  }
  func.func @transform_2(%arg0: i32, %arg1: i32) -> (i32, i32, i32) {
    %c0_i32 = arith.constant 0 : i32
    %c0_i32_0 = arith.constant 0 : i32
    %c0_i32_1 = arith.constant 0 : i32
    return %arg0, %c0_i32, %c0_i32_0 : i32, i32, i32
  }
}

</mosaic_0001>

<bundles_post_ra>
// kernel: discriminator_forward.3
= control target key start
LH: loop header
LB: loop body
LE: loop exit
PB: predicated region body
PF: predicated region fallthrough
CT: control target
= control target key end

     0   :  { %v17_v41 = vlaneseq  ;;  %vm463_vm5 = vmmov 1   ;;  %vm279_vm12 = vcmask 1040384   ;;  %s649_s2 = inlined_call_operand.vmem [shape: bf16[128,256], index: 2, kind: input, shape index: {}]   ;;  %s650_s0 = inlined_call_operand.vmem [shape: f32[1,16,128], index: 0, kind: input, shape index: {}]   ;;  %s651_s1 = inlined_call_operand.vmem [shape: f32[2,128], index: 1, kind: input, shape index: {}]   ;;  %s652_s3 = inlined_call_operand.vmem [shape: f32[4,256], index: 3, kind: input, shape index: {}]   ;;  %s653_s4 = inlined_call_operand.vmem [shape: f32[16,1], index: 4, kind: output, shape index: {}]  }
   0x1   :  { %v417_v0 = vld [vmem:[%s649_s2 + $0x70] sm:$0xf]  ;;  %v446_v1 = vld [vmem:[%s649_s2 + $0x74] sm:$0xf0]  ;;  %v445_v2 = vld [vmem:[%s649_s2 + $0x74] sm:$0xf] }
   0x2   :  { %v418_v3 = vor.u32 %v446_v1, %v417_v0  ;;  %v419_v4 = vld [vmem:[%s649_s2 + $0x78] sm:$0xf0]  ;;  %v409_v5 = vld [vmem:[%s649_s2 + $0x60] sm:$0xf]  ;;  %v444_v6 = vld [vmem:[%s649_s2 + $0x64] sm:$0xf0] }
   0x3   :  { %v422_v7 = vor.u32 %v445_v2, %v419_v4  ;;  %v443_v8 = vld [vmem:[%s649_s2 + $0x64] sm:$0xf]  ;;  %v411_v9 = vld [vmem:[%s649_s2 + $0x68] sm:$0xf0]  ;;  %v410_v10 = vor.u32 %v444_v6, %v409_v5  ;;  %v401_v12 = vld [vmem:[%s649_s2 + $0x50] sm:$0xf] }
   0x4   :  { %179 = vmatpush.bf16.msra.mxu0 %v418_v3  ;;  %v414_v11 = vor.u32 %v443_v8, %v411_v9  ;;  %v442_v13 = vld [vmem:[%s649_s2 + $0x54] sm:$0xf0]  ;;  %v441_v14 = vld [vmem:[%s649_s2 + $0x54] sm:$0xf]  ;;  %v403_v15 = vld [vmem:[%s649_s2 + $0x58] sm:$0xf0] }
   0x5   :  { %193 = vmatpush.bf16.msra.mxu1 %v422_v7  ;;  %v402_v16 = vor.u32 %v442_v13, %v401_v12  ;;  %v406_v17 = vor.u32 %v441_v14, %v403_v15  ;;  %v393_v18 = vld [vmem:[%s649_s2 + $0x40] sm:$0xf]  ;;  %v440_v19 = vld [vmem:[%s649_s2 + $0x44] sm:$0xf0]  ;;  %v439_v20 = vld [vmem:[%s649_s2 + $0x44] sm:$0xf] }
   0x6   :  { %v395_v21 = vld [vmem:[%s649_s2 + $0x48] sm:$0xf0]  ;;  %v540_v22 = vld [vmem:[%s650_s0] sm:$0xff]  ;;  %v394_v23 = vor.u32 %v440_v19, %v393_v18  ;;  %v385_v26 = vld [vmem:[%s649_s2 + $0x30] sm:$0xf]  ;;  %v582_v50 = vshrl.u32 %v17_v41, 7 }
   0x7   :  { %v23_v24 = vld [vmem:[%s650_s0 + $0x8] sm:$0xff]  ;;  %v398_v25 = vor.u32 %v439_v20, %v395_v21  ;;  %v438_v27 = vld [vmem:[%s649_s2 + $0x34] sm:$0xf0]  ;;  %v437_v29 = vld [vmem:[%s649_s2 + $0x34] sm:$0xf] }
   0x8   :  { %180 = vmatpush.bf16.msra.mxu0 %v410_v10  ;;  %v28_v28 = vadd.f32 %v23_v24, %v540_v22  ;;  %v387_v30 = vld [vmem:[%s649_s2 + $0x38] sm:$0xf0]  ;;  %v386_v32 = vor.u32 %v438_v27, %v385_v26  ;;  %v377_v34 = vld [vmem:[%s649_s2 + $0x20] sm:$0xf]  ;;  %v436_v35 = vld [vmem:[%s649_s2 + $0x24] sm:$0xf0] }
   0x9   :  { %194 = vmatpush.bf16.msra.mxu1 %v414_v11  ;;  %v390_v33 = vor.u32 %v437_v29, %v387_v30  ;;  %v435_v37 = vld [vmem:[%s649_s2 + $0x24] sm:$0xf]  ;;  %v379_v38 = vld [vmem:[%s649_s2 + $0x28] sm:$0xf0]  ;;  %v378_v40 = vor.u32 %v436_v35, %v377_v34  ;;  %v369_v43 = vld [vmem:[%s649_s2 + $0x10] sm:$0xf] }
   0xa   :  { %v29_v31 = vrot.slane %v28_v28, 4  ;;  %v382_v42 = vor.u32 %v435_v37, %v379_v38  ;;  %v434_v44 = vld [vmem:[%s649_s2 + $0x14] sm:$0xf0]  ;;  %v433_v46 = vld [vmem:[%s649_s2 + $0x14] sm:$0xf]  ;;  %vm20_vm0 = vcmp.lt.s32.totalorder %v582_v50, 4 }
   0xb   :  { %v371_v47 = vld [vmem:[%s649_s2 + $0x18] sm:$0xf0]  ;;  %v370_v49 = vor.u32 %v434_v44, %v369_v43  ;;  %v361_v52 = vld [vmem:[%s649_s2] sm:$0xf]  ;;  %v432_v53 = vld [vmem:[%s649_s2 + $0x4] sm:$0xf0] }
   0xc   :  { %181 = vmatpush.bf16.msra.mxu0 %v402_v16  ;;  %v30_v36 = vadd.f32 %v29_v31, %v28_v28  ;;  %v374_v51 = vor.u32 %v433_v46, %v371_v47  ;;  %v431_v55 = vld [vmem:[%s649_s2 + $0x4] sm:$0xf]  ;;  %v363_v56 = vld [vmem:[%s649_s2 + $0x8] sm:$0xf0]  ;;  %v362_v58 = vor.u32 %v432_v53, %v361_v52  ;;  %v26_v12 = vld [vmem:[%s651_s1] sm:$0x1] }
   0xd   :  { %195 = vmatpush.bf16.msra.mxu1 %v406_v17  ;;  %v366_v59 = vor.u32 %v431_v55, %v363_v56  ;;  %v27_v16 = vld [vmem:[%s651_s1 + $0x1] sm:$0x1]  ;;  %vm423_vm6 = vmpackc.low %vm463_vm5, %vm20_vm0 }
   0xe   :  { %v31_v39 = vrot.slane %v30_v36, 2 }
  0x10   :  { %182 = vmatpush.bf16.msra.mxu0 %v394_v23  ;;  %v32_v45 = vadd.f32 %v31_v39, %v30_v36 }
  0x11   :  { %196 = vmatpush.bf16.msra.mxu1 %v398_v25 }
  0x12   :  { %v33_v48 = vrot.slane %v32_v45, 1 }
  0x14   :  { %183 = vmatpush.bf16.msra.mxu0 %v386_v32  ;;  %v34_v54 = vadd.f32 %v33_v48, %v32_v45 }
  0x15   :  { %197 = vmatpush.bf16.msra.mxu1 %v390_v33 }
  0x16   :  { %v35_v57 = vmul.f32 0.25, %v34_v54 }
  0x18   :  { %184 = vmatpush.bf16.msra.mxu0 %v378_v40  ;;  %v36_v60 = vsub.f32 %v540_v22, %v35_v57 }
  0x19   :  { %198 = vmatpush.bf16.msra.mxu1 %v382_v42 }
  0x1a   :  { %v42_v61 = vsel %vm20_vm0, %v36_v60, 0.0 }
  0x1b   :  { %v44_v62 = vmul.f32 %v42_v61, %v42_v61 }
  0x1c   :  { %185 = vmatpush.bf16.msra.mxu0 %v370_v49 }
  0x1d   :  { %199 = vmatpush.bf16.msra.mxu1 %v374_v51  ;;  %v47_v63 = vrot.slane %v44_v62, 4 }
  0x1f   :  { %v48_v0 = vadd.f32 %v47_v63, %v44_v62 }
  0x20   :  { %186 = vmatpush.bf16.msra.mxu0 %v362_v58 }
  0x21   :  { %200 = vmatpush.bf16.msra.mxu1 %v366_v59  ;;  %v49_v1 = vrot.slane %v48_v0, 2 }
  0x23   :  { %v50_v2 = vadd.f32 %v49_v1, %v48_v0 }
  0x25   :  { %v51_v3 = vrot.slane %v50_v2, 1 }
  0x27   :  { %v52_v4 = vadd.f32 %v51_v3, %v50_v2 }
  0x29   :  { %v53_v5 = vmul.f32 0.25, %v52_v4 }
  0x2b   :  { %v54_v6 = vadd.f32 1e-05, %v53_v5 }
  0x2d   :  { %449 = vrsqrt.f32 %v54_v6  ;;  %vm61_vm1 = vweird.f32 %v54_v6 }
  0x33   :  { %v450_v7 = vpop.eup %449 }
  0x34   :  { %v56_v8 = vmul.f32 %v450_v7, %v54_v6  ;;  %vm62_vm2 = vweird.f32 %v450_v7 }
  0x35   :  { %vm63_vm3 = vmor %vm61_vm1, %vm62_vm2  ;;  %vm352_vm2 = vcmask 7168  }
  0x36   :  { %v57_v9 = vmul.f32 %v450_v7, %v56_v8 }
  0x38   :  { %v58_v10 = vmul.f32 0.5, %v57_v9 }
  0x3a   :  { %v59_v11 = vsub.f32 1.5, %v58_v10 }
  0x3c   :  { %v60_v13 = vmul.f32 %v450_v7, %v59_v11 }
  0x3e   :  { %v64_v14 = vsel %vm63_vm3, %v450_v7, %v60_v13 }
  0x3f   :  { %v65_v15 = vmul.f32 %v64_v14, %v26_v12 }
  0x41   :  { %v66_v17 = vmul.f32 %v65_v15, %v35_v57  ;;  %v68_v18 = vperm.slane %v65_v15, 0 }
  0x43   :  { %v67_v19 = vsub.f32 %v27_v16, %v66_v17  ;;  %v69_v20 = vmul.f32 %v68_v18, %v540_v22  ;;  %v207_v17 = vld [vmem:[%s652_s3] ss:$4 sm:$0x3] }
  0x45   :  { %v71_v21 = vperm.slane %v67_v19, 0 }
  0x47   :  { %v72_v23 = vadd.f32 %v71_v21, %v69_v20 }
  0x49   :  { %vm74_vm4 = vcmp.ge.f32.partialorder %v72_v23, 0.0  ;;  %v76_v24 = vmul.f32 0.2, %v72_v23 }
  0x4b   :  { %v78_v25 = vsel %vm74_vm4, %v72_v23, %v76_v24 }
  0x4c   :  { %v424_v26 = vpack.c.bf16 0.0, %v78_v25 }
  0x4e   :  { %425 = vmatmul.msk.bf16.vlgmr.msra.gmra.mxu0 %vm423_vm6, %v424_v26  ;;  %428 = vmatmul.msk.bf16.vlgmr.msra.gmra.mxu1 %vm423_vm6, %v424_v26  ;;  %v429_v26 = vld [vmem:[%s652_s3 + $0x1] ss:$4 sm:$0x3] }
  0xcb   :  { %v609_v27 = vpop.f32.mrf.mxu0  ;;  %v611_v28 = vpop.f32.mrf.mxu1 }
  0xd3   :  { %v613_v29 = vpop.f32.mrf.mxu0  ;;  %v615_v30 = vpop.f32.mrf.mxu1 }
  0xd4   :  { %v210_v22 = vadd.f32 %v613_v29, %v609_v27  ;;  %v217_v31 = vadd.f32 %v615_v30, %v611_v28 }
  0xd6   :  { %v211_v32 = vrot.slane %v210_v22, 4  ;;  %v218_v33 = vrot.slane %v217_v31, 4 }
  0xd8   :  { %v212_v34 = vadd.f32 %v211_v32, %v210_v22  ;;  %v219_v35 = vadd.f32 %v218_v33, %v217_v31 }
  0xda   :  { %v213_v36 = vrot.slane %v212_v34, 2  ;;  %v220_v37 = vrot.slane %v219_v35, 2 }
  0xdc   :  { %v214_v38 = vadd.f32 %v213_v36, %v212_v34  ;;  %v221_v39 = vadd.f32 %v220_v37, %v219_v35 }
  0xde   :  { %v215_v40 = vrot.slane %v214_v38, 1  ;;  %v222_v41 = vrot.slane %v221_v39, 1 }
  0xe0   :  { %v216_v42 = vadd.f32 %v215_v40, %v214_v38  ;;  %v223_v43 = vadd.f32 %v222_v41, %v221_v39  ;;  %v430_v39 = vld [vmem:[%s652_s3 + $0x2] ss:$4 sm:$0x3] }
  0xe2   :  { %v224_v44 = vmul.f32 0.25, %v216_v42  ;;  %v225_v45 = vmul.f32 0.25, %v223_v43 }
  0xe4   :  { %v226_v46 = vsub.f32 %v609_v27, %v224_v44  ;;  %v227_v47 = vsub.f32 %v611_v28, %v225_v45 }
  0xe6   :  { %v230_v48 = vsel %vm20_vm0, %v226_v46, 0.0  ;;  %v231_v49 = vsel %vm20_vm0, %v227_v47, 0.0  ;;  %v326_v46 = vperm.slane %v430_v39, 1 }
  0xe7   :  { %v234_v51 = vmul.f32 %v230_v48, %v230_v48  ;;  %v235_v52 = vmul.f32 %v231_v49, %v231_v49 }
  0xe9   :  { %v239_v53 = vrot.slane %v234_v51, 4  ;;  %v246_v54 = vrot.slane %v235_v52, 4 }
  0xeb   :  { %v240_v55 = vadd.f32 %v239_v53, %v234_v51  ;;  %v247_v56 = vadd.f32 %v246_v54, %v235_v52 }
  0xed   :  { %v241_v57 = vrot.slane %v240_v55, 2  ;;  %v248_v58 = vrot.slane %v247_v56, 2 }
  0xef   :  { %v242_v59 = vadd.f32 %v241_v57, %v240_v55  ;;  %v249_v60 = vadd.f32 %v248_v58, %v247_v56  ;;  %v448_v58 = vld [vmem:[%s652_s3 + $0x3] ss:$0 sm:$0xff] }
  0xf1   :  { %v243_v61 = vrot.slane %v242_v59, 1  ;;  %v250_v62 = vrot.slane %v249_v60, 1 }
  0xf3   :  { %v244_v63 = vadd.f32 %v243_v61, %v242_v59  ;;  %v251_v0 = vadd.f32 %v250_v62, %v249_v60 }
  0xf5   :  { %v252_v1 = vmul.f32 0.25, %v244_v63  ;;  %v253_v2 = vmul.f32 0.25, %v251_v0 }
  0xf7   :  { %v254_v3 = vadd.f32 1e-05, %v252_v1  ;;  %v255_v4 = vadd.f32 1e-05, %v253_v2 }
  0xf9   :  { %451 = vrsqrt.f32 %v254_v3  ;;  %vm272_vm9 = vweird.f32 %v255_v4  ;;  %vm262_vm11 = vweird.f32 %v254_v3 }
  0xfa   :  { %453 = vrsqrt.f32 %v255_v4 }
  0xff   :  { %v452_v50 = vpop.eup %451 }
 0x100   :  { %v454_v5 = vpop.eup %453  ;;  %v257_v6 = vmul.f32 %v452_v50, %v254_v3  ;;  %vm263_vm8 = vweird.f32 %v452_v50 }
 0x101   :  { %v267_v7 = vmul.f32 %v454_v5, %v255_v4  ;;  %vm273_vm7 = vweird.f32 %v454_v5  ;;  %vm264_vm13 = vmor %vm262_vm11, %vm263_vm8 }
 0x102   :  { %v258_v8 = vmul.f32 %v452_v50, %v257_v6  ;;  %vm274_vm10 = vmor %vm272_vm9, %vm273_vm7 }
 0x103   :  { %v268_v9 = vmul.f32 %v454_v5, %v267_v7 }
 0x104   :  { %v259_v10 = vmul.f32 0.5, %v258_v8 }
 0x105   :  { %v269_v11 = vmul.f32 0.5, %v268_v9 }
 0x106   :  { %v260_v12 = vsub.f32 1.5, %v259_v10 }
 0x107   :  { %v270_v13 = vsub.f32 1.5, %v269_v11 }
 0x108   :  { %v261_v14 = vmul.f32 %v452_v50, %v260_v12 }
 0x109   :  { %v271_v15 = vmul.f32 %v454_v5, %v270_v13 }
 0x10a   :  { %v265_v19 = vsel %vm264_vm13, %v452_v50, %v261_v14 }
 0x10b   :  { %v275_v16 = vsel %vm274_vm10, %v454_v5, %v271_v15 }
 0x10c   :  { %v278_v18 = vrot.slane %v275_v16, 7 }
 0x10e   :  { %v280_v20 = vsel %vm279_vm12, %v265_v19, %v278_v18 }
 0x10f   :  { %v282_v21 = vmul.f32 %v280_v20, %v207_v17 }
 0x111   :  { %v284_v23 = vperm.slane %v282_v21, 0  ;;  %v285_v24 = vperm.slane %v282_v21, 1 }
 0x113   :  { %v289_v25 = vmul.f32 %v285_v24, %v225_v45  ;;  %v288_v22 = vmul.f32 %v284_v23, %v224_v44  ;;  %v297_v34 = vmul.f32 %v285_v24, %v611_v28  ;;  %v299_v35 = vmul.f32 %v285_v24, %v615_v30 }
 0x114   :  { %v296_v38 = vmul.f32 %v284_v23, %v609_v27  ;;  %v298_v40 = vmul.f32 %v284_v23, %v613_v29  ;;  %v325_v45 = vperm.slane %v430_v39, 0 }
 0x115   :  { %v292_v31 = vrot.slane %v289_v25, 7 }
 0x117   :  { %v293_v32 = vsel %vm279_vm12, %v288_v22, %v292_v31 }
 0x118   :  { %v295_v33 = vsub.f32 %v429_v26, %v293_v32 }
 0x11a   :  { %v301_v36 = vperm.slane %v295_v33, 0  ;;  %v302_v37 = vperm.slane %v295_v33, 1 }
 0x11c   :  { %v306_v41 = vadd.f32 %v302_v37, %v297_v34  ;;  %v308_v42 = vadd.f32 %v302_v37, %v299_v35  ;;  %v305_v43 = vadd.f32 %v301_v36, %v296_v38  ;;  %v307_v44 = vadd.f32 %v301_v36, %v298_v40 }
 0x11e   :  { %v316_v47 = vmul.f32 0.2, %v308_v42  ;;  %vm309_vm14 = vcmp.ge.f32.partialorder %v305_v43, 0.0  ;;  %vm310_vm15 = vcmp.ge.f32.partialorder %v306_v41, 0.0  ;;  %v313_v28 = vmul.f32 0.2, %v305_v43 }
 0x11f   :  { %v314_v30 = vmul.f32 0.2, %v306_v41  ;;  %vm311_vm0 = vcmp.ge.f32.partialorder %v307_v44, 0.0  ;;  %vm312_vm1 = vcmp.ge.f32.partialorder %v308_v42, 0.0  ;;  %v315_v27 = vmul.f32 0.2, %v307_v44 }
 0x120   :  { %v317_v48 = vsel %vm309_vm14, %v305_v43, %v313_v28  ;;  %v320_v49 = vsel %vm312_vm1, %v308_v42, %v316_v47 }
 0x121   :  { %v318_v51 = vsel %vm310_vm15, %v306_v41, %v314_v30  ;;  %v329_v52 = vmul.f32 %v325_v45, %v317_v48  ;;  %v319_v53 = vsel %vm311_vm0, %v307_v44, %v315_v27  ;;  %v332_v29 = vmul.f32 %v326_v46, %v320_v49 }
 0x122   :  { %v330_v54 = vmul.f32 %v326_v46, %v318_v51  ;;  %v331_v55 = vmul.f32 %v325_v45, %v319_v53 }
 0x124   :  { %v333_v56 = vadd.f32 %v330_v54, %v329_v52  ;;  %v336_v57 = vadd.f32 %v332_v29, %v331_v55 }
 0x126   :  { %334 = vadd.xlane.f32.xlu0 %v333_v56 }
 0x12e   :  { %337 = vadd.xlane.f32.xlu0 %v336_v57 }
 0x199   :  { %v335_v59 = vpop.xlane.xlu0 %334 }
 0x19a   :  { %v340_v60 = vadd.f32 %v448_v58, %v335_v59 }
 0x19c   :  { %v342_v61 = vsub.f32 0.0, %v340_v60 }
 0x19e   :  { %v344_v62 = vmul.f32 1.442695, %v342_v61 }
 0x1a0   :  { %455 = vpow2.f32 %v344_v62 }
 0x1a1   :  { %v338_v63 = vpop.xlane.xlu0 %337 }
 0x1a2   :  { %v341_v0 = vadd.f32 %v448_v58, %v338_v63 }
 0x1a4   :  { %v343_v1 = vsub.f32 0.0, %v341_v0 }
 0x1a6   :  { %v456_v2 = vpop.eup %455  ;;  %v346_v3 = vmul.f32 1.442695, %v343_v1 }
 0x1a7   :  { %v348_v4 = vadd.f32 1.0, %v456_v2 }
 0x1a8   :  { %457 = vpow2.f32 %v346_v3 }
 0x1a9   :  { %459 = vrcp.f32 %v348_v4 }
 0x1ae   :  { %v458_v50 = vpop.eup %457 }
 0x1af   :  { %v460_v5 = vpop.eup %459  ;;  %v349_v6 = vadd.f32 1.0, %v458_v50 }
 0x1b0   :  { %353 = vst.msk [vmem:[%s653_s4] sm:$0xff] %vm352_vm2, %v460_v5 }
 0x1b1   :  { %461 = vrcp.f32 %v349_v6 }
 0x1b7   :  { %v462_v7 = vpop.eup %461 }
 0x1b8   :  { %354 = vst.msk [vmem:[%s653_s4 + $0x8] sm:$0xff] %vm352_vm2, %v462_v7 }

// kernel: discriminator_forward.2
= control target key start
LH: loop header
LB: loop body
LE: loop exit
PB: predicated region body
PF: predicated region fallthrough
CT: control target
= control target key end

     0   :  { %7 = vsyncpa [#allocation3], 0  ;;  %s2172_s12 = smov [#allocation2]   ;;  %s2173_s14 = smov 64   ;;  %s2295_s0 = inlined_call_operand.vmem [shape: bf16[16,2048], index: 0, kind: input, shape index: {}]   ;;  %s2296_s1 = inlined_call_operand.hbm [shape: bf16[2048,128], index: 1, kind: input, shape index: {}]   ;;  %s2297_s2 = inlined_call_operand.vmem [shape: f32[1,16,128], index: 2, kind: output, shape index: {}]  }
   0x1   :  { %s26_s11 = sshll.u32 %s2296_s1, 4  ;;  %s28_s13 = sshll.u32 %s2172_s12, 4  ;;  %s27_s11 = int_to_ptr.hbm [resolvable:$true] %s26_s11  ;;  %s29_s13 = int_to_ptr.vmem [resolvable:$true] %s28_s13 }
   0x2   :  { %s2174_s15 = smov 4  }
   0x3   :  { %34 = dma.hbm_to_vmem [thread:$0]  %s27_s11, 16384, %s29_s13, [#allocation3], %s2173_s14, %s2173_s14, %s2174_s15  }
   0x4   :  { %2170 = dma.done.wait [#allocation3], 16384  }
   0x5   :  { %2171 = vsyncadd [#allocation3], 4294950912  ;;  %v2021_v0 = vld [vmem:[#allocation2 + $0x38] sm:$0xff]  ;;  %v2020_v4 = vld [vmem:[#allocation2 + $0x30] sm:$0xff] }
   0x6   :  { %v2029_v1 = vld [vmem:[#allocation2 + $0x78] sm:$0xff]  ;;  %1183 = vmatpush.bf16.msra.mxu0 %v2021_v0  ;;  %v2028_v5 = vld [vmem:[#allocation2 + $0x70] sm:$0xff]  ;;  %v2019_v8 = vld [vmem:[#allocation2 + $0x28] sm:$0xff] }
   0x7   :  { %v2037_v2 = vld [vmem:[#allocation2 + $0xb8] sm:$0xff]  ;;  %1197 = vmatpush.bf16.msra.mxu1 %v2029_v1  ;;  %v2036_v6 = vld [vmem:[#allocation2 + $0xb0] sm:$0xff]  ;;  %v2027_v9 = vld [vmem:[#allocation2 + $0x68] sm:$0xff] }
   0x8   :  { %v2045_v3 = vld [vmem:[#allocation2 + $0xf8] sm:$0xff]  ;;  %1211 = vmatpush.bf16.msra.mxu2 %v2037_v2  ;;  %v2044_v7 = vld [vmem:[#allocation2 + $0xf0] sm:$0xff]  ;;  %v2035_v10 = vld [vmem:[#allocation2 + $0xa8] sm:$0xff] }
   0x9   :  { %1225 = vmatpush.bf16.msra.mxu3 %v2045_v3  ;;  %v2043_v11 = vld [vmem:[#allocation2 + $0xe8] sm:$0xff]  ;;  %v2018_v12 = vld [vmem:[#allocation2 + $0x20] sm:$0xff]  ;;  %v2017_v16 = vld [vmem:[#allocation2 + $0x18] sm:$0xff] }
   0xa   :  { %1184 = vmatpush.bf16.msra.mxu0 %v2020_v4  ;;  %v2026_v13 = vld [vmem:[#allocation2 + $0x60] sm:$0xff]  ;;  %v2025_v17 = vld [vmem:[#allocation2 + $0x58] sm:$0xff]  ;;  %v2016_v20 = vld [vmem:[#allocation2 + $0x10] sm:$0xff] }
   0xb   :  { %1198 = vmatpush.bf16.msra.mxu1 %v2028_v5  ;;  %v2034_v14 = vld [vmem:[#allocation2 + $0xa0] sm:$0xff]  ;;  %v2033_v18 = vld [vmem:[#allocation2 + $0x98] sm:$0xff]  ;;  %v2024_v21 = vld [vmem:[#allocation2 + $0x50] sm:$0xff] }
   0xc   :  { %1212 = vmatpush.bf16.msra.mxu2 %v2036_v6  ;;  %v2042_v15 = vld [vmem:[#allocation2 + $0xe0] sm:$0xff]  ;;  %v2041_v19 = vld [vmem:[#allocation2 + $0xd8] sm:$0xff]  ;;  %v2032_v22 = vld [vmem:[#allocation2 + $0x90] sm:$0xff] }
   0xd   :  { %1226 = vmatpush.bf16.msra.mxu3 %v2044_v7  ;;  %v2040_v23 = vld [vmem:[#allocation2 + $0xd0] sm:$0xff]  ;;  %v2015_v24 = vld [vmem:[#allocation2 + $0x8] sm:$0xff]  ;;  %v2014_v28 = vld [vmem:[#allocation2] sm:$0xff] }
   0xe   :  { %1185 = vmatpush.bf16.msra.mxu0 %v2019_v8  ;;  %v2023_v25 = vld [vmem:[#allocation2 + $0x48] sm:$0xff]  ;;  %v2022_v29 = vld [vmem:[#allocation2 + $0x40] sm:$0xff]  ;;  %v2053_v32 = vld [vmem:[#allocation2 + $0x138] sm:$0xff] }
   0xf   :  { %1199 = vmatpush.bf16.msra.mxu1 %v2027_v9  ;;  %v2031_v26 = vld [vmem:[#allocation2 + $0x88] sm:$0xff]  ;;  %v2030_v30 = vld [vmem:[#allocation2 + $0x80] sm:$0xff]  ;;  %v2061_v33 = vld [vmem:[#allocation2 + $0x178] sm:$0xff] }
  0x10   :  { %1213 = vmatpush.bf16.msra.mxu2 %v2035_v10  ;;  %v2039_v27 = vld [vmem:[#allocation2 + $0xc8] sm:$0xff]  ;;  %v2038_v31 = vld [vmem:[#allocation2 + $0xc0] sm:$0xff]  ;;  %v2069_v42 = vld [vmem:[#allocation2 + $0x1b8] sm:$0xff] }
  0x11   :  { %1227 = vmatpush.bf16.msra.mxu3 %v2043_v11  ;;  %v1424_v34 = vld [vmem:[%s2295_s0] sm:$0xf]  ;;  %v1432_v36 = vld [vmem:[%s2295_s0 + $0x8] sm:$0xf]  ;;  %v1998_v38 = vld [vmem:[%s2295_s0 + $0x4] sm:$0xf] }
  0x12   :  { %1186 = vmatpush.bf16.msra.mxu0 %v2018_v12  ;;  %v2006_v35 = vld [vmem:[%s2295_s0 + $0x3c] sm:$0xf0]  ;;  %v2007_v37 = vld [vmem:[%s2295_s0 + $0x44] sm:$0xf0]  ;;  %v1426_v39 = vld [vmem:[%s2295_s0 + $0x40] sm:$0xf0] }
  0x13   :  { %1200 = vmatpush.bf16.msra.mxu1 %v2026_v13  ;;  %v1999_v40 = vld [vmem:[%s2295_s0 + $0xc] sm:$0xf]  ;;  %v2077_v43 = vld [vmem:[#allocation2 + $0x1f8] sm:$0xff]  ;;  %v1425_v44 = vor.u32 %v2006_v35, %v1424_v34  ;;  %v1433_v45 = vor.u32 %v2007_v37, %v1432_v36  ;;  %v1429_v46 = vor.u32 %v1998_v38, %v1426_v39  ;;  %v2052_v48 = vld [vmem:[#allocation2 + $0x130] sm:$0xff] }
  0x14   :  { %1214 = vmatpush.bf16.msra.mxu2 %v2034_v14  ;;  %v1434_v41 = vld [vmem:[%s2295_s0 + $0x48] sm:$0xf0]  ;;  %v2060_v49 = vld [vmem:[#allocation2 + $0x170] sm:$0xff]  ;;  %v2050_v56 = vld [vmem:[#allocation2 + $0x120] sm:$0xff] }
  0x15   :  { %1228 = vmatpush.bf16.msra.mxu3 %v2042_v15  ;;  %v1437_v47 = vor.u32 %v1999_v40, %v1434_v41  ;;  %v2068_v50 = vld [vmem:[#allocation2 + $0x1b0] sm:$0xff]  ;;  %v2051_v52 = vld [vmem:[#allocation2 + $0x128] sm:$0xff]  ;;  %v2058_v57 = vld [vmem:[#allocation2 + $0x160] sm:$0xff] }
  0x16   :  { %1187 = vmatpush.bf16.msra.mxu0 %v2017_v16  ;;  %v2076_v51 = vld [vmem:[#allocation2 + $0x1f0] sm:$0xff]  ;;  %v2059_v53 = vld [vmem:[#allocation2 + $0x168] sm:$0xff]  ;;  %v2066_v58 = vld [vmem:[#allocation2 + $0x1a0] sm:$0xff] }
  0x17   :  { %1201 = vmatpush.bf16.msra.mxu1 %v2025_v17  ;;  %v2067_v54 = vld [vmem:[#allocation2 + $0x1a8] sm:$0xff]  ;;  %v2074_v59 = vld [vmem:[#allocation2 + $0x1e0] sm:$0xff]  ;;  %v2049_v60 = vld [vmem:[#allocation2 + $0x118] sm:$0xff] }
  0x18   :  { %1215 = vmatpush.bf16.msra.mxu2 %v2033_v18  ;;  %v2075_v55 = vld [vmem:[#allocation2 + $0x1e8] sm:$0xff]  ;;  %v2057_v61 = vld [vmem:[#allocation2 + $0x158] sm:$0xff]  ;;  %v2048_v0 = vld [vmem:[#allocation2 + $0x110] sm:$0xff] }
  0x19   :  { %1229 = vmatpush.bf16.msra.mxu3 %v2041_v19  ;;  %v2065_v62 = vld [vmem:[#allocation2 + $0x198] sm:$0xff]  ;;  %v2056_v1 = vld [vmem:[#allocation2 + $0x150] sm:$0xff]  ;;  %v2047_v4 = vld [vmem:[#allocation2 + $0x108] sm:$0xff] }
  0x1a   :  { %1188 = vmatpush.bf16.msra.mxu0 %v2016_v20  ;;  %v2073_v63 = vld [vmem:[#allocation2 + $0x1d8] sm:$0xff]  ;;  %v2064_v2 = vld [vmem:[#allocation2 + $0x190] sm:$0xff]  ;;  %v2055_v5 = vld [vmem:[#allocation2 + $0x148] sm:$0xff] }
  0x1b   :  { %1202 = vmatpush.bf16.msra.mxu1 %v2024_v21  ;;  %v2072_v3 = vld [vmem:[#allocation2 + $0x1d0] sm:$0xff]  ;;  %v2063_v6 = vld [vmem:[#allocation2 + $0x188] sm:$0xff]  ;;  %v2046_v8 = vld [vmem:[#allocation2 + $0x100] sm:$0xff] }
  0x1c   :  { %1216 = vmatpush.bf16.msra.mxu2 %v2032_v22  ;;  %v2071_v7 = vld [vmem:[#allocation2 + $0x1c8] sm:$0xff]  ;;  %v2054_v9 = vld [vmem:[#allocation2 + $0x140] sm:$0xff]  ;;  %v2085_v12 = vld [vmem:[#allocation2 + $0x238] sm:$0xff] }
  0x1d   :  { %1230 = vmatpush.bf16.msra.mxu3 %v2040_v23  ;;  %v2062_v10 = vld [vmem:[#allocation2 + $0x180] sm:$0xff]  ;;  %v2093_v13 = vld [vmem:[#allocation2 + $0x278] sm:$0xff]  ;;  %v1440_v14 = vld [vmem:[%s2295_s0 + $0x10] sm:$0xf] }
  0x1e   :  { %1189 = vmatpush.bf16.msra.mxu0 %v2015_v24  ;;  %v2070_v11 = vld [vmem:[#allocation2 + $0x1c0] sm:$0xff]  ;;  %v2008_v15 = vld [vmem:[%s2295_s0 + $0x4c] sm:$0xf0]  ;;  %v1448_v16 = vld [vmem:[%s2295_s0 + $0x18] sm:$0xf] }
  0x1f   :  { %1203 = vmatpush.bf16.msra.mxu1 %v2023_v25  ;;  %v2009_v17 = vld [vmem:[%s2295_s0 + $0x54] sm:$0xf0]  ;;  %v2000_v18 = vld [vmem:[%s2295_s0 + $0x14] sm:$0xf]  ;;  %v2001_v20 = vld [vmem:[%s2295_s0 + $0x1c] sm:$0xf]  ;;  %v1441_v24 = vor.u32 %v2008_v15, %v1440_v14 }
  0x20   :  { %1217 = vmatpush.bf16.msra.mxu2 %v2031_v26  ;;  %v1442_v19 = vld [vmem:[%s2295_s0 + $0x50] sm:$0xf0]  ;;  %v1450_v21 = vld [vmem:[%s2295_s0 + $0x58] sm:$0xf0]  ;;  %v1449_v25 = vor.u32 %v2009_v17, %v1448_v16  ;;  %v2099_v34 = vld [vmem:[#allocation2 + $0x2a8] sm:$0xff] }
  0x21   :  { %1231 = vmatpush.bf16.msra.mxu3 %v2039_v27  ;;  %v2101_v22 = vld [vmem:[#allocation2 + $0x2b8] sm:$0xff]  ;;  %v1445_v26 = vor.u32 %v2000_v18, %v1442_v19  ;;  %v1453_v27 = vor.u32 %v2001_v20, %v1450_v21  ;;  %v2107_v35 = vld [vmem:[#allocation2 + $0x2e8] sm:$0xff]  ;;  %v2082_v36 = vld [vmem:[#allocation2 + $0x220] sm:$0xff] }
  0x22   :  { %1190 = vmatpush.bf16.msra.mxu0 %v2014_v28  ;;  %v2109_v23 = vld [vmem:[#allocation2 + $0x2f8] sm:$0xff]  ;;  %v2084_v28 = vld [vmem:[#allocation2 + $0x230] sm:$0xff]  ;;  %v2090_v37 = vld [vmem:[#allocation2 + $0x260] sm:$0xff] }
  0x23   :  { %1204 = vmatpush.bf16.msra.mxu1 %v2022_v29  ;;  %v2092_v29 = vld [vmem:[#allocation2 + $0x270] sm:$0xff]  ;;  %v2098_v38 = vld [vmem:[#allocation2 + $0x2a0] sm:$0xff]  ;;  %v2081_v40 = vld [vmem:[#allocation2 + $0x218] sm:$0xff] }
  0x24   :  { %1218 = vmatpush.bf16.msra.mxu2 %v2030_v30  ;;  %v2100_v30 = vld [vmem:[#allocation2 + $0x2b0] sm:$0xff]  ;;  %v2106_v39 = vld [vmem:[#allocation2 + $0x2e0] sm:$0xff]  ;;  %v2089_v41 = vld [vmem:[#allocation2 + $0x258] sm:$0xff] }
  0x25   :  { %1232 = vmatpush.bf16.msra.mxu3 %v2038_v31  ;;  %1191 = vmatmul.bf16.vlgmr.msra.gmra.mxu0 %v1425_v44  ;;  %v2108_v31 = vld [vmem:[#allocation2 + $0x2f0] sm:$0xff]  ;;  %v2131_v14 = vld [vmem:[#allocation2 + $0x3a8] sm:$0xff]  ;;  %v2114_v16 = vld [vmem:[#allocation2 + $0x320] sm:$0xff] }
  0x26   :  { %1239 = vmatpush.bf16.msrb.mxu0 %v2053_v32  ;;  %1205 = vmatmul.bf16.vlgmr.msra.gmra.mxu1 %v1429_v46  ;;  %v2083_v32 = vld [vmem:[#allocation2 + $0x228] sm:$0xff]  ;;  %v2080_v44 = vld [vmem:[#allocation2 + $0x210] sm:$0xff]  ;;  %v2122_v17 = vld [vmem:[#allocation2 + $0x360] sm:$0xff] }
  0x27   :  { %1253 = vmatpush.bf16.msrb.mxu1 %v2061_v33  ;;  %1219 = vmatmul.bf16.vlgmr.msra.gmra.mxu2 %v1433_v45  ;;  %v2091_v33 = vld [vmem:[#allocation2 + $0x268] sm:$0xff]  ;;  %v2088_v45 = vld [vmem:[#allocation2 + $0x250] sm:$0xff]  ;;  %v2130_v18 = vld [vmem:[#allocation2 + $0x3a0] sm:$0xff] }
  0x28   :  { %1267 = vmatpush.bf16.msrb.mxu2 %v2069_v42  ;;  %1233 = vmatmul.bf16.vlgmr.msra.gmra.mxu3 %v1437_v47  ;;  %v2097_v42 = vld [vmem:[#allocation2 + $0x298] sm:$0xff]  ;;  %v2096_v46 = vld [vmem:[#allocation2 + $0x290] sm:$0xff]  ;;  %v2139_v15 = vld [vmem:[#allocation2 + $0x3e8] sm:$0xff] }
  0x29   :  { %1281 = vmatpush.bf16.msrb.mxu3 %v2077_v43  ;;  %v2105_v43 = vld [vmem:[#allocation2 + $0x2d8] sm:$0xff]  ;;  %v2104_v47 = vld [vmem:[#allocation2 + $0x2d0] sm:$0xff]  ;;  %v2138_v19 = vld [vmem:[#allocation2 + $0x3e0] sm:$0xff] }
  0x2a   :  { %1240 = vmatpush.bf16.msrb.mxu0 %v2052_v48  ;;  %v2079_v48 = vld [vmem:[#allocation2 + $0x208] sm:$0xff]  ;;  %v2113_v20 = vld [vmem:[#allocation2 + $0x318] sm:$0xff] }
  0x2b   :  { %1254 = vmatpush.bf16.msrb.mxu1 %v2060_v49  ;;  %v2087_v49 = vld [vmem:[#allocation2 + $0x248] sm:$0xff]  ;;  %v2121_v21 = vld [vmem:[#allocation2 + $0x358] sm:$0xff] }
  0x2c   :  { %1268 = vmatpush.bf16.msrb.mxu2 %v2068_v50  ;;  %v2095_v50 = vld [vmem:[#allocation2 + $0x288] sm:$0xff] }
  0x2d   :  { %1282 = vmatpush.bf16.msrb.mxu3 %v2076_v51  ;;  %v2103_v51 = vld [vmem:[#allocation2 + $0x2c8] sm:$0xff] }
  0x2e   :  { %1241 = vmatpush.bf16.msrb.mxu0 %v2051_v52  ;;  %v2078_v52 = vld [vmem:[#allocation2 + $0x200] sm:$0xff] }
  0x2f   :  { %1255 = vmatpush.bf16.msrb.mxu1 %v2059_v53  ;;  %v2086_v53 = vld [vmem:[#allocation2 + $0x240] sm:$0xff] }
  0x30   :  { %1269 = vmatpush.bf16.msrb.mxu2 %v2067_v54  ;;  %v2094_v54 = vld [vmem:[#allocation2 + $0x280] sm:$0xff] }
  0x31   :  { %1283 = vmatpush.bf16.msrb.mxu3 %v2075_v55  ;;  %v2102_v55 = vld [vmem:[#allocation2 + $0x2c0] sm:$0xff] }
  0x32   :  { %1242 = vmatpush.bf16.msrb.mxu0 %v2050_v56  ;;  %v2117_v56 = vld [vmem:[#allocation2 + $0x338] sm:$0xff] }
  0x33   :  { %1256 = vmatpush.bf16.msrb.mxu1 %v2058_v57  ;;  %v2125_v57 = vld [vmem:[#allocation2 + $0x378] sm:$0xff] }
  0x34   :  { %1270 = vmatpush.bf16.msrb.mxu2 %v2066_v58  ;;  %v1456_v58 = vld [vmem:[%s2295_s0 + $0x20] sm:$0xf] }
  0x35   :  { %1284 = vmatpush.bf16.msrb.mxu3 %v2074_v59  ;;  %v2010_v59 = vld [vmem:[%s2295_s0 + $0x5c] sm:$0xf0] }
  0x36   :  { %1243 = vmatpush.bf16.msrb.mxu0 %v2049_v60  ;;  %v1464_v60 = vld [vmem:[%s2295_s0 + $0x28] sm:$0xf] }
  0x37   :  { %1257 = vmatpush.bf16.msrb.mxu1 %v2057_v61  ;;  %v2011_v61 = vld [vmem:[%s2295_s0 + $0x64] sm:$0xf0] }
  0x38   :  { %1271 = vmatpush.bf16.msrb.mxu2 %v2065_v62  ;;  %v2002_v62 = vld [vmem:[%s2295_s0 + $0x24] sm:$0xf] }
  0x39   :  { %1285 = vmatpush.bf16.msrb.mxu3 %v2073_v63  ;;  %v1458_v63 = vld [vmem:[%s2295_s0 + $0x60] sm:$0xf0] }
  0x3a   :  { %1244 = vmatpush.bf16.msrb.mxu0 %v2048_v0  ;;  %v2003_v0 = vld [vmem:[%s2295_s0 + $0x2c] sm:$0xf] }
  0x3b   :  { %1258 = vmatpush.bf16.msrb.mxu1 %v2056_v1  ;;  %v1466_v1 = vld [vmem:[%s2295_s0 + $0x68] sm:$0xf0] }
  0x3c   :  { %1272 = vmatpush.bf16.msrb.mxu2 %v2064_v2  ;;  %v2133_v2 = vld [vmem:[#allocation2 + $0x3b8] sm:$0xff] }
  0x3d   :  { %1286 = vmatpush.bf16.msrb.mxu3 %v2072_v3  ;;  %v2141_v3 = vld [vmem:[#allocation2 + $0x3f8] sm:$0xff] }
  0x3e   :  { %1245 = vmatpush.bf16.msrb.mxu0 %v2047_v4  ;;  %v1457_v4 = vor.u32 %v2010_v59, %v1456_v58 }
  0x3f   :  { %1259 = vmatpush.bf16.msrb.mxu1 %v2055_v5  ;;  %v1465_v5 = vor.u32 %v2011_v61, %v1464_v60 }
  0x40   :  { %1273 = vmatpush.bf16.msrb.mxu2 %v2063_v6  ;;  %v1461_v6 = vor.u32 %v2002_v62, %v1458_v63 }
  0x41   :  { %1287 = vmatpush.bf16.msrb.mxu3 %v2071_v7  ;;  %v1469_v7 = vor.u32 %v2003_v0, %v1466_v1 }
  0x42   :  { %1246 = vmatpush.bf16.msrb.mxu0 %v2046_v8  ;;  %v2116_v8 = vld [vmem:[#allocation2 + $0x330] sm:$0xff] }
  0x43   :  { %1260 = vmatpush.bf16.msrb.mxu1 %v2054_v9  ;;  %v2124_v9 = vld [vmem:[#allocation2 + $0x370] sm:$0xff] }
  0x44   :  { %1274 = vmatpush.bf16.msrb.mxu2 %v2062_v10  ;;  %v2132_v10 = vld [vmem:[#allocation2 + $0x3b0] sm:$0xff] }
  0x45   :  { %1288 = vmatpush.bf16.msrb.mxu3 %v2070_v11  ;;  %1247 = vmatmul.bf16.vlgmr.msrb.gmra.mxu0 %v1441_v24  ;;  %v2140_v11 = vld [vmem:[#allocation2 + $0x3f0] sm:$0xff] }
  0x46   :  { %1295 = vmatpush.bf16.msra.mxu0 %v2085_v12  ;;  %1261 = vmatmul.bf16.vlgmr.msrb.gmra.mxu1 %v1445_v26  ;;  %v2115_v12 = vld [vmem:[#allocation2 + $0x328] sm:$0xff]  ;;  %v2112_v24 = vld [vmem:[#allocation2 + $0x310] sm:$0xff] }
  0x47   :  { %1309 = vmatpush.bf16.msra.mxu1 %v2093_v13  ;;  %1275 = vmatmul.bf16.vlgmr.msrb.gmra.mxu2 %v1449_v25  ;;  %v2123_v13 = vld [vmem:[#allocation2 + $0x368] sm:$0xff]  ;;  %v2120_v25 = vld [vmem:[#allocation2 + $0x350] sm:$0xff] }
  0x48   :  { %1323 = vmatpush.bf16.msra.mxu2 %v2101_v22  ;;  %1289 = vmatmul.bf16.vlgmr.msrb.gmra.mxu3 %v1453_v27  ;;  %v2129_v22 = vld [vmem:[#allocation2 + $0x398] sm:$0xff]  ;;  %v2128_v26 = vld [vmem:[#allocation2 + $0x390] sm:$0xff] }
  0x49   :  { %1337 = vmatpush.bf16.msra.mxu3 %v2109_v23  ;;  %v2137_v23 = vld [vmem:[#allocation2 + $0x3d8] sm:$0xff]  ;;  %v2136_v27 = vld [vmem:[#allocation2 + $0x3d0] sm:$0xff] }
  0x4a   :  { %1296 = vmatpush.bf16.msra.mxu0 %v2084_v28  ;;  %v2111_v28 = vld [vmem:[#allocation2 + $0x308] sm:$0xff] }
  0x4b   :  { %1310 = vmatpush.bf16.msra.mxu1 %v2092_v29  ;;  %v2119_v29 = vld [vmem:[#allocation2 + $0x348] sm:$0xff] }
  0x4c   :  { %1324 = vmatpush.bf16.msra.mxu2 %v2100_v30  ;;  %v2127_v30 = vld [vmem:[#allocation2 + $0x388] sm:$0xff] }
  0x4d   :  { %1338 = vmatpush.bf16.msra.mxu3 %v2108_v31  ;;  %v2135_v31 = vld [vmem:[#allocation2 + $0x3c8] sm:$0xff] }
  0x4e   :  { %1297 = vmatpush.bf16.msra.mxu0 %v2083_v32  ;;  %v2110_v32 = vld [vmem:[#allocation2 + $0x300] sm:$0xff] }
  0x4f   :  { %1311 = vmatpush.bf16.msra.mxu1 %v2091_v33  ;;  %v2118_v33 = vld [vmem:[#allocation2 + $0x340] sm:$0xff] }
  0x50   :  { %1325 = vmatpush.bf16.msra.mxu2 %v2099_v34  ;;  %v2126_v34 = vld [vmem:[#allocation2 + $0x380] sm:$0xff] }
  0x51   :  { %1339 = vmatpush.bf16.msra.mxu3 %v2107_v35  ;;  %v2134_v35 = vld [vmem:[#allocation2 + $0x3c0] sm:$0xff] }
  0x52   :  { %1298 = vmatpush.bf16.msra.mxu0 %v2082_v36  ;;  %v1472_v36 = vld [vmem:[%s2295_s0 + $0x30] sm:$0xf] }
  0x53   :  { %1312 = vmatpush.bf16.msra.mxu1 %v2090_v37  ;;  %v2012_v37 = vld [vmem:[%s2295_s0 + $0x6c] sm:$0xf0] }
  0x54   :  { %1326 = vmatpush.bf16.msra.mxu2 %v2098_v38  ;;  %v2004_v38 = vld [vmem:[%s2295_s0 + $0x34] sm:$0xf] }
  0x55   :  { %1340 = vmatpush.bf16.msra.mxu3 %v2106_v39  ;;  %v1474_v39 = vld [vmem:[%s2295_s0 + $0x70] sm:$0xf0] }
  0x56   :  { %1299 = vmatpush.bf16.msra.mxu0 %v2081_v40  ;;  %v1480_v40 = vld [vmem:[%s2295_s0 + $0x38] sm:$0xf] }
  0x57   :  { %1313 = vmatpush.bf16.msra.mxu1 %v2089_v41  ;;  %v2013_v41 = vld [vmem:[%s2295_s0 + $0x74] sm:$0xf0] }
  0x58   :  { %1327 = vmatpush.bf16.msra.mxu2 %v2097_v42  ;;  %v2005_v42 = vld [vmem:[%s2295_s0 + $0x3c] sm:$0xf] }
  0x59   :  { %1341 = vmatpush.bf16.msra.mxu3 %v2105_v43  ;;  %v1482_v43 = vld [vmem:[%s2295_s0 + $0x78] sm:$0xf0] }
  0x5a   :  { %1300 = vmatpush.bf16.msra.mxu0 %v2080_v44  ;;  %v1473_v44 = vor.u32 %v2012_v37, %v1472_v36 }
  0x5b   :  { %1314 = vmatpush.bf16.msra.mxu1 %v2088_v45  ;;  %v1477_v45 = vor.u32 %v2004_v38, %v1474_v39 }
  0x5c   :  { %1328 = vmatpush.bf16.msra.mxu2 %v2096_v46  ;;  %v1481_v46 = vor.u32 %v2013_v41, %v1480_v40 }
  0x5d   :  { %1342 = vmatpush.bf16.msra.mxu3 %v2104_v47  ;;  %v1485_v47 = vor.u32 %v2005_v42, %v1482_v43 }
  0x5e   :  { %1301 = vmatpush.bf16.msra.mxu0 %v2079_v48 }
  0x5f   :  { %1315 = vmatpush.bf16.msra.mxu1 %v2087_v49 }
  0x60   :  { %1329 = vmatpush.bf16.msra.mxu2 %v2095_v50 }
  0x61   :  { %1343 = vmatpush.bf16.msra.mxu3 %v2103_v51 }
  0x62   :  { %1302 = vmatpush.bf16.msra.mxu0 %v2078_v52 }
  0x63   :  { %1316 = vmatpush.bf16.msra.mxu1 %v2086_v53 }
  0x64   :  { %1330 = vmatpush.bf16.msra.mxu2 %v2094_v54 }
  0x65   :  { %1344 = vmatpush.bf16.msra.mxu3 %v2102_v55  ;;  %1303 = vmatmul.bf16.vlgmr.msra.gmra.mxu0 %v1457_v4 }
  0x66   :  { %1351 = vmatpush.bf16.msrb.mxu0 %v2117_v56  ;;  %1317 = vmatmul.bf16.vlgmr.msra.gmra.mxu1 %v1461_v6 }
  0x67   :  { %1365 = vmatpush.bf16.msrb.mxu1 %v2125_v57  ;;  %1331 = vmatmul.bf16.vlgmr.msra.gmra.mxu2 %v1465_v5 }
  0x68   :  { %1379 = vmatpush.bf16.msrb.mxu2 %v2133_v2  ;;  %1345 = vmatmul.bf16.vlgmr.msra.gmra.mxu3 %v1469_v7 }
  0x69   :  { %1393 = vmatpush.bf16.msrb.mxu3 %v2141_v3 }
  0x6a   :  { %1352 = vmatpush.bf16.msrb.mxu0 %v2116_v8 }
  0x6b   :  { %1366 = vmatpush.bf16.msrb.mxu1 %v2124_v9 }
  0x6c   :  { %1380 = vmatpush.bf16.msrb.mxu2 %v2132_v10 }
  0x6d   :  { %1394 = vmatpush.bf16.msrb.mxu3 %v2140_v11 }
  0x6e   :  { %1353 = vmatpush.bf16.msrb.mxu0 %v2115_v12 }
  0x6f   :  { %1367 = vmatpush.bf16.msrb.mxu1 %v2123_v13 }
  0x70   :  { %1381 = vmatpush.bf16.msrb.mxu2 %v2131_v14 }
  0x71   :  { %1395 = vmatpush.bf16.msrb.mxu3 %v2139_v15 }
  0x72   :  { %1354 = vmatpush.bf16.msrb.mxu0 %v2114_v16 }
  0x73   :  { %1368 = vmatpush.bf16.msrb.mxu1 %v2122_v17 }
  0x74   :  { %1382 = vmatpush.bf16.msrb.mxu2 %v2130_v18 }
  0x75   :  { %1396 = vmatpush.bf16.msrb.mxu3 %v2138_v19 }
  0x76   :  { %1355 = vmatpush.bf16.msrb.mxu0 %v2113_v20 }
  0x77   :  { %1369 = vmatpush.bf16.msrb.mxu1 %v2121_v21 }
  0x78   :  { %1383 = vmatpush.bf16.msrb.mxu2 %v2129_v22 }
  0x79   :  { %1397 = vmatpush.bf16.msrb.mxu3 %v2137_v23 }
  0x7a   :  { %1356 = vmatpush.bf16.msrb.mxu0 %v2112_v24 }
  0x7b   :  { %1370 = vmatpush.bf16.msrb.mxu1 %v2120_v25 }
  0x7c   :  { %1384 = vmatpush.bf16.msrb.mxu2 %v2128_v26 }
  0x7d   :  { %1398 = vmatpush.bf16.msrb.mxu3 %v2136_v27 }
  0x7e   :  { %1357 = vmatpush.bf16.msrb.mxu0 %v2111_v28 }
  0x7f   :  { %1371 = vmatpush.bf16.msrb.mxu1 %v2119_v29 }
  0x80   :  { %1385 = vmatpush.bf16.msrb.mxu2 %v2127_v30 }
  0x81   :  { %1399 = vmatpush.bf16.msrb.mxu3 %v2135_v31 }
  0x82   :  { %1358 = vmatpush.bf16.msrb.mxu0 %v2110_v32 }
  0x83   :  { %1372 = vmatpush.bf16.msrb.mxu1 %v2118_v33 }
  0x84   :  { %1386 = vmatpush.bf16.msrb.mxu2 %v2126_v34 }
  0x85   :  { %1400 = vmatpush.bf16.msrb.mxu3 %v2134_v35  ;;  %1359 = vmatmul.bf16.vlgmr.msrb.gmra.mxu0 %v1473_v44 }
  0x86   :  { %1373 = vmatmul.bf16.vlgmr.msrb.gmra.mxu1 %v1477_v45 }
  0x87   :  { %1387 = vmatmul.bf16.vlgmr.msrb.gmra.mxu2 %v1481_v46 }
  0x88   :  { %1401 = vmatmul.bf16.vlgmr.msrb.gmra.mxu3 %v1485_v47 }
  0xa2   :  { %v1192_v48 = vpop.f32.mrf.mxu0 }
  0xa3   :  { %v1206_v49 = vpop.f32.mrf.mxu1 }
  0xa4   :  { %v1207_v56 = vadd.f32 %v1206_v49, %v1192_v48 }
  0xaa   :  { %v1220_v50 = vpop.f32.mrf.mxu2  ;;  %v1194_v52 = vpop.f32.mrf.mxu0 }
  0xab   :  { %v1234_v51 = vpop.f32.mrf.mxu3  ;;  %v1208_v53 = vpop.f32.mrf.mxu1  ;;  %v1221_v59 = vadd.f32 %v1220_v50, %v1207_v56 }
  0xac   :  { %v1209_v0 = vadd.f32 %v1208_v53, %v1194_v52 }
  0xad   :  { %v1235_v62 = vadd.f32 %v1234_v51, %v1221_v59 }
  0xb2   :  { %v1222_v54 = vpop.f32.mrf.mxu2 }
  0xb3   :  { %v1236_v55 = vpop.f32.mrf.mxu3  ;;  %v1223_v3 = vadd.f32 %v1222_v54, %v1209_v0 }
  0xb5   :  { %v1237_v8 = vadd.f32 %v1236_v55, %v1223_v3 }
  0xc2   :  { %v1248_v57 = vpop.f32.mrf.mxu0 }
  0xc3   :  { %v1262_v58 = vpop.f32.mrf.mxu1  ;;  %v1249_v1 = vadd.f32 %v1248_v57, %v1235_v62 }
  0xc5   :  { %v1263_v4 = vadd.f32 %v1262_v58, %v1249_v1 }
  0xca   :  { %v1276_v60 = vpop.f32.mrf.mxu2  ;;  %v1250_v63 = vpop.f32.mrf.mxu0 }
  0xcb   :  { %v1290_v61 = vpop.f32.mrf.mxu3  ;;  %v1264_v2 = vpop.f32.mrf.mxu1  ;;  %v1277_v9 = vadd.f32 %v1276_v60, %v1263_v4  ;;  %v1251_v11 = vadd.f32 %v1250_v63, %v1237_v8 }
  0xcd   :  { %v1291_v12 = vadd.f32 %v1290_v61, %v1277_v9  ;;  %v1265_v15 = vadd.f32 %v1264_v2, %v1251_v11 }
  0xd2   :  { %v1278_v5 = vpop.f32.mrf.mxu2 }
  0xd3   :  { %v1292_v6 = vpop.f32.mrf.mxu3  ;;  %v1279_v17 = vadd.f32 %v1278_v5, %v1265_v15 }
  0xd5   :  { %v1293_v21 = vadd.f32 %v1292_v6, %v1279_v17 }
  0xe2   :  { %v1304_v7 = vpop.f32.mrf.mxu0 }
  0xe3   :  { %v1318_v10 = vpop.f32.mrf.mxu1  ;;  %v1305_v16 = vadd.f32 %v1304_v7, %v1291_v12 }
  0xe5   :  { %v1319_v19 = vadd.f32 %v1318_v10, %v1305_v16 }
  0xea   :  { %v1332_v13 = vpop.f32.mrf.mxu2  ;;  %v1306_v18 = vpop.f32.mrf.mxu0 }
  0xeb   :  { %v1346_v14 = vpop.f32.mrf.mxu3  ;;  %v1320_v20 = vpop.f32.mrf.mxu1  ;;  %v1333_v22 = vadd.f32 %v1332_v13, %v1319_v19  ;;  %v1307_v23 = vadd.f32 %v1306_v18, %v1293_v21 }
  0xed   :  { %v1347_v26 = vadd.f32 %v1346_v14, %v1333_v22  ;;  %v1321_v28 = vadd.f32 %v1320_v20, %v1307_v23 }
  0xf2   :  { %v1334_v24 = vpop.f32.mrf.mxu2 }
  0xf3   :  { %v1348_v25 = vpop.f32.mrf.mxu3  ;;  %v1335_v31 = vadd.f32 %v1334_v24, %v1321_v28 }
  0xf5   :  { %v1349_v35 = vadd.f32 %v1348_v25, %v1335_v31 }
 0x102   :  { %v1360_v27 = vpop.f32.mrf.mxu0 }
 0x103   :  { %v1361_v29 = vadd.f32 %v1360_v27, %v1347_v26  ;;  %v1374_v30 = vpop.f32.mrf.mxu1 }
 0x105   :  { %v1375_v32 = vadd.f32 %v1374_v30, %v1361_v29 }
 0x10a   :  { %v1388_v33 = vpop.f32.mrf.mxu2  ;;  %v1362_v37 = vpop.f32.mrf.mxu0 }
 0x10b   :  { %v1402_v34 = vpop.f32.mrf.mxu3  ;;  %v1389_v36 = vadd.f32 %v1388_v33, %v1375_v32  ;;  %v1363_v39 = vadd.f32 %v1362_v37, %v1349_v35  ;;  %v1376_v40 = vpop.f32.mrf.mxu1 }
 0x10d   :  { %v1403_v38 = vadd.f32 %v1402_v34, %v1389_v36  ;;  %v1377_v41 = vadd.f32 %v1376_v40, %v1363_v39 }
 0x10f   :  { %1409 = vst [vmem:[%s2297_s2] sm:$0xff] %v1403_v38 }
 0x112   :  { %v1390_v42 = vpop.f32.mrf.mxu2 }
 0x113   :  { %v1391_v43 = vadd.f32 %v1390_v42, %v1377_v41  ;;  %v1404_v44 = vpop.f32.mrf.mxu3 }
 0x115   :  { %v1405_v45 = vadd.f32 %v1404_v44, %v1391_v43 }
 0x117   :  { %1410 = vst [vmem:[%s2297_s2 + $0x8] sm:$0xff] %v1405_v45 }
 0x118   :  { %1415 = vsyncpa [#allocation3], 1 }

</bundles_post_ra>
